<compile_context>
chip_gen: v5e
topology: v5e:2x2
jax: 0.10.0
libtpu: 0.0.40
codegen_flags: <defaults>
</compile_context>

<pallas_src>
import math
import functools

import jax
import jax.numpy as jnp
from jax.experimental import pallas as pl
from jax.experimental.pallas import tpu as pltpu

# ------------------------- model dimensions (small) -------------------------
B = 2               # batch (number of lyric strings)
S = 8               # padded sequence length (max_length analogue)
VOCAB = 100         # synthetic tokenizer vocab
D_ENC = 32          # encoder hidden size (AutoModel hidden_size analogue)
D_FFN = 4 * D_ENC   # 128
D_OUT = 16          # config.hidden_size (projection output)
PAD = 128           # lane-dense padded feature width
LN_EPS = 1e-5
ROWS = B * S        # 16 flattened (batch, seq) rows

VEC_STATIC_ROWS = 16          # rows 0..15: parameter vectors (one per row)
VEC_ROWS = VEC_STATIC_ROWS + ROWS   # rows 16..31: attention additive bias

assert D_FFN == PAD and D_ENC <= PAD and D_OUT <= PAD and ROWS <= PAD
NEG_INF = -1e9  # kept in f32 everywhere (would saturate bf16)


# ------------------------------ Pallas kernel -------------------------------
def _layer_norm_padded(h, gamma, beta):
    """LayerNorm over the real D_ENC features of a 128-lane padded tensor.

    Padded lanes of `h`, `gamma`, `beta` are exactly zero, so full-width sums
    equal the real sums and the padded lanes of the output stay zero.
    """
    inv_d = 1.0 / D_ENC
    mu = jnp.sum(h, axis=-1, keepdims=True) * inv_d
    var = jnp.sum(h * h, axis=-1, keepdims=True) * inv_d - mu * mu
    return (h - mu) * jax.lax.rsqrt(var + LN_EPS) * gamma + beta


def lyric_encoder_kernel(
    x_ref,    # (ROWS, PAD)      bf16 token embeddings, lanes >= D_ENC are 0
    w_ref,    # (7*PAD, PAD)     bf16 stacked weight slab
    vec_ref,  # (VEC_ROWS, PAD)  f32 packed bias / LN / attention-bias slab
    out_ref,  # (ROWS, PAD)      f32 projected hidden states (lane-dense)
):
    f32 = jnp.float32
    bf16 = jnp.bfloat16

    xf = x_ref[...]                              # (16, 128) bf16
    vec = vec_ref[...]                           # (32, 128) f32

    # --- parameter-vector slab: one vector per sublane row, lane 0 aligned --
    bq    = vec[0:1, :]
    bk    = vec[1:2, :]
    bv    = vec[2:3, :]
    bo    = vec[3:4, :]
    ln1_g = vec[4:5, :]
    ln1_b = vec[5:6, :]
    ln2_g = vec[6:7, :]
    ln2_b = vec[7:8, :]
    b1    = vec[8:9, :]
    b2    = vec[9:10, :]
    bp    = vec[10:11, :]
    attn_bias = vec[VEC_STATIC_ROWS:VEC_STATIC_ROWS + ROWS, 0:ROWS]   # (16, 16)

    # --- weight slab: 7 stacked 128x128 bf16 blocks (row offsets 128-aligned)
    wq = w_ref[0 * PAD:1 * PAD, :]   # Wq * (1/sqrt(D_ENC)) folded in
    wk = w_ref[1 * PAD:2 * PAD, :]
    wv = w_ref[2 * PAD:3 * PAD, :]
    wo = w_ref[3 * PAD:4 * PAD, :]
    w1 = w_ref[4 * PAD:5 * PAD, :]
    w2 = w_ref[5 * PAD:6 * PAD, :]
    wp = w_ref[6 * PAD:7 * PAD, :]

    # --- Q / K / V projections (lane-aligned, no unpacking needed) ----------
    q = jnp.dot(xf, wq, preferred_element_type=f32) + bq      # (16, 128)
    k = jnp.dot(xf, wk, preferred_element_type=f32) + bk
    v = jnp.dot(xf, wv, preferred_element_type=f32) + bv

    # --- attention with batch folded into the row axis ----------------------
    # scores[i, j] = q_i . k_j ; cross-batch / padded-key pairs are masked by
    # the precomputed additive bias (block-diagonal + key padding).
    scores = jax.lax.dot_general(
        q.astype(bf16), k.astype(bf16),
        (((1,), (1,)), ((), ())), preferred_element_type=f32)  # (16, 16)
    scores = scores + attn_bias                                # f32 add

    smax = jnp.max(scores, axis=-1, keepdims=True)
    p = jnp.exp(scores - smax)
    p = p * pl.reciprocal(jnp.sum(p, axis=-1, keepdims=True), approx=True)

    attn = jnp.dot(p.astype(bf16), v.astype(bf16),
                   preferred_element_type=f32)                 # (16, 128)
    attn = jnp.dot(attn.astype(bf16), wo, preferred_element_type=f32) + bo

    h = _layer_norm_padded(xf.astype(f32) + attn, ln1_g, ln1_b)

    # --- feed-forward --------------------------------------------------------
    ff = jnp.dot(h.astype(bf16), w1, preferred_element_type=f32) + b1
    # TODO(synk): HF configs often use exact (erf) GELU; tanh approximation
    # kept for guaranteed Mosaic lowering (small deviation vs torch reference).
    ff = jax.nn.gelu(ff, approximate=True)
    ff = jnp.dot(ff.astype(bf16), w2, preferred_element_type=f32) + b2

    h2 = _layer_norm_padded(h + ff, ln2_g, ln2_b)              # last_hidden_state

    # --- projection (nn.Linear(D_ENC, D_OUT)), lane-dense padded output -----
    proj = jnp.dot(h2.astype(bf16), wp, preferred_element_type=f32) + bp
    out_ref[...] = proj


# ------------------------------ weight packing -------------------------------
def pack_params(params):
    """Done ONCE per weight set: fold 1/sqrt(D) into Wq, zero-pad every weight
    to a 128x128 block, stack into one bf16 slab, pack vectors one-per-row,
    pad+cast the embedding table to bf16."""
    scale = 1.0 / math.sqrt(D_ENC)

    def wblock(w):
        r, c = w.shape
        return jnp.zeros((PAD, PAD), jnp.float32).at[:r, :c].set(w)

    w_slab = jnp.concatenate(
        [wblock(params["wq"] * scale), wblock(params["wk"]),
         wblock(params["wv"]), wblock(params["wo"]),
         wblock(params["w1"]), wblock(params["w2"]),
         wblock(params["wp"])], axis=0).astype(jnp.bfloat16)     # (896, 128)

    def vrow(v):
        v = v.reshape(-1).astype(jnp.float32)
        return jnp.pad(v, (0, PAD - v.shape[0]))                 # zero-padded

    rows = [vrow(params["bq"] * scale), vrow(params["bk"]), vrow(params["bv"]),
            vrow(params["bo"]), vrow(params["ln1_g"]), vrow(params["ln1_b"]),
            vrow(params["ln2_g"]), vrow(params["ln2_b"]), vrow(params["b1"]),
            vrow(params["b2"]), vrow(params["bp"])]
    rows += [jnp.zeros((PAD,), jnp.float32)] * (VEC_STATIC_ROWS - len(rows))
    vec_static = jnp.stack(rows, axis=0)                         # (16, 128)

    emb_pad = jnp.pad(params["embedding"],
                      ((0, 0), (0, PAD - D_ENC))).astype(jnp.bfloat16)
    return w_slab, vec_static, emb_pad


# ------------------------------ jitted forward -------------------------------
@functools.partial(jax.jit)
def lyric_encoder_forward(token_ids, attention_mask, w_slab, vec_static, emb_pad):
    """Returns (projected [B,S,D_OUT] float32, attention_mask [B,S])."""
    # embedding lookup (glue) -> flattened, 128-lane padded, bf16
    x = jnp.take(emb_pad, token_ids, axis=0).reshape(ROWS, PAD)

    # additive attention bias: block-diagonal (same batch) AND valid key.
    # Note: a fully-padded sequence would get a uniform softmax over NEG_INF
    # logits (finite output); not hit by real batches with >=1 valid token.
    batch_ids = jnp.arange(ROWS, dtype=jnp.int32) // S
    same = batch_ids[:, None] == batch_ids[None, :]
    key_valid = attention_mask.reshape(1, ROWS) > 0
    bias = jnp.where(same & key_valid, 0.0, NEG_INF).astype(jnp.float32)
    bias_block = jnp.pad(bias, ((0, 0), (0, PAD - ROWS)))        # (16, 128)
    vec = jnp.concatenate([vec_static, bias_block], axis=0)      # (32, 128)

    vmem = pltpu.MemorySpace.VMEM
    out_padded = pl.pallas_call(
        lyric_encoder_kernel,
        out_shape=jax.ShapeDtypeStruct((ROWS, PAD), jnp.float32),
        in_specs=[pl.BlockSpec(memory_space=vmem),
                  pl.BlockSpec(memory_space=vmem),
                  pl.BlockSpec(memory_space=vmem)],
        out_specs=pl.BlockSpec(memory_space=vmem),
        cost_estimate=pl.CostEstimate(
            flops=4_000_000, transcendentals=2_500, bytes_accessed=260_000),
    )(x, w_slab, vec)

    projected = out_padded[:, :D_OUT].reshape(B, S, D_OUT)
    return projected, attention_mask


# --------------------------- deterministic params ----------------------------
def init_params(key):
    ks = jax.random.split(key, 8)
    s = 0.02
    zeros = lambda n: jnp.zeros((n,), jnp.float32)
    return {
        # TODO(synk): pretrained AutoModel weights cannot be loaded; a single
        # synthetic encoder layer with deterministic init stands in for it.
        "embedding": s * jax.random.normal(ks[0], (VOCAB, D_ENC), jnp.float32),
        "wq": s * jax.random.normal(ks[1], (D_ENC, D_ENC), jnp.float32),
        "bq": zeros(D_ENC),
        "wk": s * jax.random.normal(ks[2], (D_ENC, D_ENC), jnp.float32),
        "bk": zeros(D_ENC),
        "wv": s * jax.random.normal(ks[3], (D_ENC, D_ENC), jnp.float32),
        "bv": zeros(D_ENC),
        "wo": s * jax.random.normal(ks[4], (D_ENC, D_ENC), jnp.float32),
        "bo": zeros(D_ENC),
        "ln1_g": jnp.ones((D_ENC,), jnp.float32),
        "ln1_b": zeros(D_ENC),
        "w1": s * jax.random.normal(ks[5], (D_ENC, D_FFN), jnp.float32),
        "b1": zeros(D_FFN),
        "w2": s * jax.random.normal(ks[6], (D_FFN, D_ENC), jnp.float32),
        "b2": zeros(D_ENC),
        "ln2_g": jnp.ones((D_ENC,), jnp.float32),
        "ln2_b": zeros(D_ENC),
        # projection = nn.Linear(D_ENC, D_OUT); stored transposed (in, out)
        "wp": s * jax.random.normal(ks[7], (D_ENC, D_OUT), jnp.float32),
        "bp": zeros(D_OUT),
    }


if __name__ == "__main__":
    key = jax.random.PRNGKey(0)
    pkey, tkey = jax.random.split(key)
    params = init_params(pkey)

    # TODO(synk): HF tokenizer is string processing with no Pallas equivalent;
    # deterministic synthetic token ids + a padding mask are used instead.
    token_ids = jax.random.randint(tkey, (B, S), 0, VOCAB, dtype=jnp.int32)
    attention_mask = jnp.array(
        [[1, 1, 1, 1, 1, 1, 1, 1],
         [1, 1, 1, 1, 1, 0, 0, 0]], dtype=jnp.int32)

    # Pack / cast / pad the weights ONCE; reuse across forward calls.
    w_slab, vec_static, emb_pad = pack_params(params)

    projected, mask_out = lyric_encoder_forward(
        token_ids, attention_mask, w_slab, vec_static, emb_pad)
    jax.block_until_ready(projected)
    jax.block_until_ready(mask_out)

    assert projected.shape == (B, S, D_OUT)
    assert mask_out.shape == (B, S)
    assert bool(jnp.all(jnp.isfinite(projected)))
    print("KERNEL_OK")
</pallas_src>

<mosaic_0001>
module attributes {stable_mosaic.version = 11 : i64} {
  func.func @lyric_encoder_kernel(%arg0: memref<16x128xbf16, #tpu.memory_space<vmem>>, %arg1: memref<896x128xbf16, #tpu.memory_space<vmem>>, %arg2: memref<32x128xf32, #tpu.memory_space<vmem>>, %arg3: memref<16x128xf32, #tpu.memory_space<vmem>>) attributes {dimension_semantics = [], scalar_prefetch = 0 : i64, scratch_operands = 0 : i64, tpu.core_type = #tpu.core_type<tc>} {
    %c0 = arith.constant 0 : index
    %c0_0 = arith.constant 0 : index
    %0 = vector.load %arg0[%c0, %c0_0] : memref<16x128xbf16, #tpu.memory_space<vmem>>, vector<16x128xbf16>
    %c0_1 = arith.constant 0 : index
    %c0_2 = arith.constant 0 : index
    %1 = vector.load %arg2[%c0_1, %c0_2] : memref<32x128xf32, #tpu.memory_space<vmem>>, vector<32x128xf32>
    %2 = vector.extract_strided_slice %1 {offsets = [0, 0], sizes = [1, 128], strides = [1, 1]} : vector<32x128xf32> to vector<1x128xf32>
    %3 = vector.extract_strided_slice %1 {offsets = [1, 0], sizes = [1, 128], strides = [1, 1]} : vector<32x128xf32> to vector<1x128xf32>
    %4 = vector.extract_strided_slice %1 {offsets = [2, 0], sizes = [1, 128], strides = [1, 1]} : vector<32x128xf32> to vector<1x128xf32>
    %5 = vector.extract_strided_slice %1 {offsets = [3, 0], sizes = [1, 128], strides = [1, 1]} : vector<32x128xf32> to vector<1x128xf32>
    %6 = vector.extract_strided_slice %1 {offsets = [4, 0], sizes = [1, 128], strides = [1, 1]} : vector<32x128xf32> to vector<1x128xf32>
    %7 = vector.extract_strided_slice %1 {offsets = [5, 0], sizes = [1, 128], strides = [1, 1]} : vector<32x128xf32> to vector<1x128xf32>
    %8 = vector.extract_strided_slice %1 {offsets = [6, 0], sizes = [1, 128], strides = [1, 1]} : vector<32x128xf32> to vector<1x128xf32>
    %9 = vector.extract_strided_slice %1 {offsets = [7, 0], sizes = [1, 128], strides = [1, 1]} : vector<32x128xf32> to vector<1x128xf32>
    %10 = vector.extract_strided_slice %1 {offsets = [8, 0], sizes = [1, 128], strides = [1, 1]} : vector<32x128xf32> to vector<1x128xf32>
    %11 = vector.extract_strided_slice %1 {offsets = [9, 0], sizes = [1, 128], strides = [1, 1]} : vector<32x128xf32> to vector<1x128xf32>
    %12 = vector.extract_strided_slice %1 {offsets = [10, 0], sizes = [1, 128], strides = [1, 1]} : vector<32x128xf32> to vector<1x128xf32>
    %13 = vector.extract_strided_slice %1 {offsets = [16, 0], sizes = [16, 16], strides = [1, 1]} : vector<32x128xf32> to vector<16x16xf32>
    %c0_3 = arith.constant 0 : index
    %c0_4 = arith.constant 0 : index
    %14 = vector.load %arg1[%c0_3, %c0_4] : memref<896x128xbf16, #tpu.memory_space<vmem>>, vector<128x128xbf16>
    %c128 = arith.constant 128 : index
    %c0_5 = arith.constant 0 : index
    %15 = vector.load %arg1[%c128, %c0_5] : memref<896x128xbf16, #tpu.memory_space<vmem>>, vector<128x128xbf16>
    %c256 = arith.constant 256 : index
    %c0_6 = arith.constant 0 : index
    %16 = vector.load %arg1[%c256, %c0_6] : memref<896x128xbf16, #tpu.memory_space<vmem>>, vector<128x128xbf16>
    %c384 = arith.constant 384 : index
    %c0_7 = arith.constant 0 : index
    %17 = vector.load %arg1[%c384, %c0_7] : memref<896x128xbf16, #tpu.memory_space<vmem>>, vector<128x128xbf16>
    %c512 = arith.constant 512 : index
    %c0_8 = arith.constant 0 : index
    %18 = vector.load %arg1[%c512, %c0_8] : memref<896x128xbf16, #tpu.memory_space<vmem>>, vector<128x128xbf16>
    %c640 = arith.constant 640 : index
    %c0_9 = arith.constant 0 : index
    %19 = vector.load %arg1[%c640, %c0_9] : memref<896x128xbf16, #tpu.memory_space<vmem>>, vector<128x128xbf16>
    %c768 = arith.constant 768 : index
    %c0_10 = arith.constant 0 : index
    %20 = vector.load %arg1[%c768, %c0_10] : memref<896x128xbf16, #tpu.memory_space<vmem>>, vector<128x128xbf16>
    %cst = arith.constant dense<0.000000e+00> : vector<16x128xf32>
    %21 = tpu.matmul %0, %14, %cst {dimension_numbers = #tpu.dot_dimension_numbers<[1], [0], [0], [1], [0, 0, 1, 1], [], []>} : vector<16x128xbf16>, vector<128x128xbf16>, vector<16x128xf32> -> vector<16x128xf32>
    %22 = vector.broadcast %2 : vector<1x128xf32> to vector<16x128xf32>
    %23 = arith.addf %21, %22 : vector<16x128xf32>
    %cst_11 = arith.constant dense<0.000000e+00> : vector<16x128xf32>
    %24 = tpu.matmul %0, %15, %cst_11 {dimension_numbers = #tpu.dot_dimension_numbers<[1], [0], [0], [1], [0, 0, 1, 1], [], []>} : vector<16x128xbf16>, vector<128x128xbf16>, vector<16x128xf32> -> vector<16x128xf32>
    %25 = vector.broadcast %3 : vector<1x128xf32> to vector<16x128xf32>
    %26 = arith.addf %24, %25 : vector<16x128xf32>
    %cst_12 = arith.constant dense<0.000000e+00> : vector<16x128xf32>
    %27 = tpu.matmul %0, %16, %cst_12 {dimension_numbers = #tpu.dot_dimension_numbers<[1], [0], [0], [1], [0, 0, 1, 1], [], []>} : vector<16x128xbf16>, vector<128x128xbf16>, vector<16x128xf32> -> vector<16x128xf32>
    %28 = vector.broadcast %4 : vector<1x128xf32> to vector<16x128xf32>
    %29 = arith.addf %27, %28 : vector<16x128xf32>
    %30 = arith.truncf %23 : vector<16x128xf32> to vector<16x128xbf16>
    %31 = arith.truncf %26 : vector<16x128xf32> to vector<16x128xbf16>
    %cst_13 = arith.constant dense<0.000000e+00> : vector<16x16xf32>
    %32 = tpu.matmul %30, %31, %cst_13 {dimension_numbers = #tpu.dot_dimension_numbers<[1], [1], [0], [0], [0, 0, 1, 0], [], []>} : vector<16x128xbf16>, vector<16x128xbf16>, vector<16x16xf32> -> vector<16x16xf32>
    %33 = arith.addf %32, %13 : vector<16x16xf32>
    %cst_14 = arith.constant dense<0xFF800000> : vector<16xf32>
    %34 = vector.multi_reduction <maximumf>, %33, %cst_14 [1] : vector<16x16xf32> to vector<16xf32>
    %35 = vector.shape_cast %34 : vector<16xf32> to vector<16x1xf32>
    %36 = vector.broadcast %35 : vector<16x1xf32> to vector<16x16xf32>
    %37 = arith.subf %33, %36 : vector<16x16xf32>
    %38 = math.exp %37 : vector<16x16xf32>
    %cst_15 = arith.constant dense<0.000000e+00> : vector<16xf32>
    %39 = vector.multi_reduction <add>, %38, %cst_15 [1] : vector<16x16xf32> to vector<16xf32>
    %40 = vector.shape_cast %39 : vector<16xf32> to vector<16x1xf32>
    %41 = tpu.reciprocal %40 {approx = true} : vector<16x1xf32> -> vector<16x1xf32>
    %42 = vector.broadcast %41 : vector<16x1xf32> to vector<16x16xf32>
    %43 = arith.mulf %38, %42 : vector<16x16xf32>
    %44 = arith.truncf %43 : vector<16x16xf32> to vector<16x16xbf16>
    %45 = arith.truncf %29 : vector<16x128xf32> to vector<16x128xbf16>
    %cst_16 = arith.constant dense<0.000000e+00> : vector<16x128xf32>
    %46 = tpu.matmul %44, %45, %cst_16 {dimension_numbers = #tpu.dot_dimension_numbers<[1], [0], [0], [1], [0, 0, 1, 1], [], []>} : vector<16x16xbf16>, vector<16x128xbf16>, vector<16x128xf32> -> vector<16x128xf32>
    %47 = arith.truncf %46 : vector<16x128xf32> to vector<16x128xbf16>
    %cst_17 = arith.constant dense<0.000000e+00> : vector<16x128xf32>
    %48 = tpu.matmul %47, %17, %cst_17 {dimension_numbers = #tpu.dot_dimension_numbers<[1], [0], [0], [1], [0, 0, 1, 1], [], []>} : vector<16x128xbf16>, vector<128x128xbf16>, vector<16x128xf32> -> vector<16x128xf32>
    %49 = vector.broadcast %5 : vector<1x128xf32> to vector<16x128xf32>
    %50 = arith.addf %48, %49 : vector<16x128xf32>
    %51 = arith.extf %0 : vector<16x128xbf16> to vector<16x128xf32>
    %52 = arith.addf %51, %50 : vector<16x128xf32>
    %cst_18 = arith.constant dense<0.000000e+00> : vector<16xf32>
    %53 = vector.multi_reduction <add>, %52, %cst_18 [1] : vector<16x128xf32> to vector<16xf32>
    %54 = vector.shape_cast %53 : vector<16xf32> to vector<16x1xf32>
    %cst_19 = arith.constant 3.125000e-02 : f32
    %55 = vector.broadcast %cst_19 : f32 to vector<16x1xf32>
    %56 = arith.mulf %54, %55 : vector<16x1xf32>
    %57 = arith.mulf %52, %52 : vector<16x128xf32>
    %cst_20 = arith.constant dense<0.000000e+00> : vector<16xf32>
    %58 = vector.multi_reduction <add>, %57, %cst_20 [1] : vector<16x128xf32> to vector<16xf32>
    %59 = vector.shape_cast %58 : vector<16xf32> to vector<16x1xf32>
    %cst_21 = arith.constant 3.125000e-02 : f32
    %60 = vector.broadcast %cst_21 : f32 to vector<16x1xf32>
    %61 = arith.mulf %59, %60 : vector<16x1xf32>
    %62 = arith.mulf %56, %56 : vector<16x1xf32>
    %63 = arith.subf %61, %62 : vector<16x1xf32>
    %64 = vector.broadcast %56 : vector<16x1xf32> to vector<16x128xf32>
    %65 = arith.subf %52, %64 : vector<16x128xf32>
    %cst_22 = arith.constant 9.99999974E-6 : f32
    %66 = vector.broadcast %cst_22 : f32 to vector<16x1xf32>
    %67 = arith.addf %63, %66 : vector<16x1xf32>
    %68 = math.rsqrt %67 : vector<16x1xf32>
    %69 = vector.broadcast %68 : vector<16x1xf32> to vector<16x128xf32>
    %70 = arith.mulf %65, %69 : vector<16x128xf32>
    %71 = vector.broadcast %6 : vector<1x128xf32> to vector<16x128xf32>
    %72 = arith.mulf %70, %71 : vector<16x128xf32>
    %73 = vector.broadcast %7 : vector<1x128xf32> to vector<16x128xf32>
    %74 = arith.addf %72, %73 : vector<16x128xf32>
    %75 = arith.truncf %74 : vector<16x128xf32> to vector<16x128xbf16>
    %cst_23 = arith.constant dense<0.000000e+00> : vector<16x128xf32>
    %76 = tpu.matmul %75, %18, %cst_23 {dimension_numbers = #tpu.dot_dimension_numbers<[1], [0], [0], [1], [0, 0, 1, 1], [], []>} : vector<16x128xbf16>, vector<128x128xbf16>, vector<16x128xf32> -> vector<16x128xf32>
    %77 = vector.broadcast %10 : vector<1x128xf32> to vector<16x128xf32>
    %78 = arith.addf %76, %77 : vector<16x128xf32>
    %79 = arith.mulf %78, %78 : vector<16x128xf32>
    %80 = arith.mulf %78, %79 : vector<16x128xf32>
    %cst_24 = arith.constant 4.471500e-02 : f32
    %81 = vector.broadcast %cst_24 : f32 to vector<16x128xf32>
    %82 = arith.mulf %81, %80 : vector<16x128xf32>
    %83 = arith.addf %78, %82 : vector<16x128xf32>
    %cst_25 = arith.constant 0.797884583 : f32
    %84 = vector.broadcast %cst_25 : f32 to vector<16x128xf32>
    %85 = arith.mulf %84, %83 : vector<16x128xf32>
    %86 = math.tanh %85 : vector<16x128xf32>
    %cst_26 = arith.constant 1.000000e+00 : f32
    %87 = vector.broadcast %cst_26 : f32 to vector<16x128xf32>
    %88 = arith.addf %87, %86 : vector<16x128xf32>
    %cst_27 = arith.constant 5.000000e-01 : f32
    %89 = vector.broadcast %cst_27 : f32 to vector<16x128xf32>
    %90 = arith.mulf %89, %88 : vector<16x128xf32>
    %91 = arith.mulf %78, %90 : vector<16x128xf32>
    %92 = arith.truncf %91 : vector<16x128xf32> to vector<16x128xbf16>
    %cst_28 = arith.constant dense<0.000000e+00> : vector<16x128xf32>
    %93 = tpu.matmul %92, %19, %cst_28 {dimension_numbers = #tpu.dot_dimension_numbers<[1], [0], [0], [1], [0, 0, 1, 1], [], []>} : vector<16x128xbf16>, vector<128x128xbf16>, vector<16x128xf32> -> vector<16x128xf32>
    %94 = vector.broadcast %11 : vector<1x128xf32> to vector<16x128xf32>
    %95 = arith.addf %93, %94 : vector<16x128xf32>
    %96 = arith.addf %74, %95 : vector<16x128xf32>
    %cst_29 = arith.constant dense<0.000000e+00> : vector<16xf32>
    %97 = vector.multi_reduction <add>, %96, %cst_29 [1] : vector<16x128xf32> to vector<16xf32>
    %98 = vector.shape_cast %97 : vector<16xf32> to vector<16x1xf32>
    %cst_30 = arith.constant 3.125000e-02 : f32
    %99 = vector.broadcast %cst_30 : f32 to vector<16x1xf32>
    %100 = arith.mulf %98, %99 : vector<16x1xf32>
    %101 = arith.mulf %96, %96 : vector<16x128xf32>
    %cst_31 = arith.constant dense<0.000000e+00> : vector<16xf32>
    %102 = vector.multi_reduction <add>, %101, %cst_31 [1] : vector<16x128xf32> to vector<16xf32>
    %103 = vector.shape_cast %102 : vector<16xf32> to vector<16x1xf32>
    %cst_32 = arith.constant 3.125000e-02 : f32
    %104 = vector.broadcast %cst_32 : f32 to vector<16x1xf32>
    %105 = arith.mulf %103, %104 : vector<16x1xf32>
    %106 = arith.mulf %100, %100 : vector<16x1xf32>
    %107 = arith.subf %105, %106 : vector<16x1xf32>
    %108 = vector.broadcast %100 : vector<16x1xf32> to vector<16x128xf32>
    %109 = arith.subf %96, %108 : vector<16x128xf32>
    %cst_33 = arith.constant 9.99999974E-6 : f32
    %110 = vector.broadcast %cst_33 : f32 to vector<16x1xf32>
    %111 = arith.addf %107, %110 : vector<16x1xf32>
    %112 = math.rsqrt %111 : vector<16x1xf32>
    %113 = vector.broadcast %112 : vector<16x1xf32> to vector<16x128xf32>
    %114 = arith.mulf %109, %113 : vector<16x128xf32>
    %115 = vector.broadcast %8 : vector<1x128xf32> to vector<16x128xf32>
    %116 = arith.mulf %114, %115 : vector<16x128xf32>
    %117 = vector.broadcast %9 : vector<1x128xf32> to vector<16x128xf32>
    %118 = arith.addf %116, %117 : vector<16x128xf32>
    %119 = arith.truncf %118 : vector<16x128xf32> to vector<16x128xbf16>
    %cst_34 = arith.constant dense<0.000000e+00> : vector<16x128xf32>
    %120 = tpu.matmul %119, %20, %cst_34 {dimension_numbers = #tpu.dot_dimension_numbers<[1], [0], [0], [1], [0, 0, 1, 1], [], []>} : vector<16x128xbf16>, vector<128x128xbf16>, vector<16x128xf32> -> vector<16x128xf32>
    %121 = vector.broadcast %12 : vector<1x128xf32> to vector<16x128xf32>
    %122 = arith.addf %120, %121 : vector<16x128xf32>
    %c0_35 = arith.constant 0 : index
    %c0_36 = arith.constant 0 : index
    %123 = vector.load %arg3[%c0_35, %c0_36] : memref<16x128xf32, #tpu.memory_space<vmem>>, vector<16x128xf32>
    tpu.vector_store %arg3[%c0_35, %c0_36], %122 {strides = array<i32>} : memref<16x128xf32, #tpu.memory_space<vmem>>, vector<16x128xf32>,
    return
  }
}

</mosaic_0001>

<bundles_post_ra>
// kernel: lyric_encoder_forward.1
= control target key start
LH: loop header
LB: loop body
LE: loop exit
PB: predicated region body
PF: predicated region fallthrough
CT: control target
= control target key end

     0   :  { %8 = vsyncpa [#allocation3], 0  ;;  %s1124_s15 = smov [#allocation2]   ;;  %s1125_s17 = smov 64   ;;  %s1194_s0 = inlined_call_operand.vmem [shape: bf16[16,128], index: 0, kind: input, shape index: {}]   ;;  %s1195_s1 = inlined_call_operand.hbm [shape: bf16[896,128], index: 1, kind: input, shape index: {}]   ;;  %s1196_s2 = inlined_call_operand.vmem [shape: f32[32,128], index: 2, kind: input, shape index: {}]   ;;  %s1197_s3 = inlined_call_operand.vmem [shape: f32[16,128], index: 3, kind: output, shape index: {}]  }
   0x1   :  { %s15_s14 = sshll.u32 %s1195_s1, 4  ;;  %s17_s16 = sshll.u32 %s1124_s15, 4  ;;  %s16_s14 = int_to_ptr.hbm [resolvable:$true] %s15_s14  ;;  %s18_s16 = int_to_ptr.vmem [resolvable:$true] %s17_s16 }
   0x2   :  { %s1126_s18 = smov 4  }
   0x3   :  { %23 = dma.hbm_to_vmem [thread:$0]  %s16_s14, 7168, %s18_s16, [#allocation3], %s1125_s17, %s1125_s17, %s1126_s18  }
   0x4   :  { %1122 = dma.done.wait [#allocation3], 7168  }
   0x5   :  { %1123 = vsyncadd [#allocation3], 4294960128  ;;  %v1026_v0 = vld [vmem:[#allocation2 + $0x38] sm:$0xff]  ;;  %v1025_v2 = vld [vmem:[#allocation2 + $0x30] sm:$0xff]  ;;  %vm360_vm0 = vcmask 130048  }
   0x6   :  { %v1034_v1 = vld [vmem:[#allocation2 + $0x78] sm:$0xff]  ;;  %204 = vmatpush.bf16.msra.mxu0 %v1026_v0  ;;  %v1033_v3 = vld [vmem:[#allocation2 + $0x70] sm:$0xff]  ;;  %v1024_v4 = vld [vmem:[#allocation2 + $0x28] sm:$0xff] }
   0x7   :  { %267 = vmatpush.bf16.msra.mxu1 %v1034_v1  ;;  %v1032_v5 = vld [vmem:[#allocation2 + $0x68] sm:$0xff]  ;;  %v1023_v6 = vld [vmem:[#allocation2 + $0x20] sm:$0xff]  ;;  %v1022_v8 = vld [vmem:[#allocation2 + $0x18] sm:$0xff] }
   0x8   :  { %v1031_v7 = vld [vmem:[#allocation2 + $0x60] sm:$0xff]  ;;  %v1030_v9 = vld [vmem:[#allocation2 + $0x58] sm:$0xff]  ;;  %v1021_v10 = vld [vmem:[#allocation2 + $0x10] sm:$0xff] }
   0x9   :  { %v1029_v11 = vld [vmem:[#allocation2 + $0x50] sm:$0xff]  ;;  %v1020_v12 = vld [vmem:[#allocation2 + $0x8] sm:$0xff]  ;;  %v1019_v14 = vld [vmem:[#allocation2] sm:$0xff] }
   0xa   :  { %205 = vmatpush.bf16.msra.mxu0 %v1025_v2  ;;  %v1028_v13 = vld [vmem:[#allocation2 + $0x48] sm:$0xff]  ;;  %v1027_v15 = vld [vmem:[#allocation2 + $0x40] sm:$0xff]  ;;  %v1042_v30 = vld [vmem:[#allocation2 + $0xb8] sm:$0xff] }
   0xb   :  { %268 = vmatpush.bf16.msra.mxu1 %v1033_v3  ;;  %v1018_v16 = vld [vmem:[%s1194_s0] sm:$0xff]  ;;  %330 = vmatpush.bf16.msra.mxu2 %v1042_v30  ;;  %v1041_v31 = vld [vmem:[#allocation2 + $0xb0] sm:$0xff]  ;;  %v1040_v32 = vld [vmem:[#allocation2 + $0xa8] sm:$0xff] }
   0xc   :  { %v1156_v19 = vld [vmem:[%s1196_s2] sm:$0xff]  ;;  %v1038_v34 = vld [vmem:[#allocation2 + $0x98] sm:$0xff]  ;;  %v35_v35 = vld [vmem:[%s1196_s2 + $0x10] sm:$0xff] }
   0xd   :  { %v218_v20 = vperm.slane %v1156_v19, 1  ;;  %v149_v24 = vperm.slane %v1156_v19, 0  ;;  %v1039_v33 = vld [vmem:[#allocation2 + $0xa0] sm:$0xff]  ;;  %v1037_v36 = vld [vmem:[#allocation2 + $0x90] sm:$0xff]  ;;  %v1036_v39 = vld [vmem:[#allocation2 + $0x88] sm:$0xff]  ;;  %v281_v57 = vperm.slane %v1156_v19, 2 }
   0xe   :  { %206 = vmatpush.bf16.msra.mxu0 %v1024_v4  ;;  %v36_v41 = vld [vmem:[%s1196_s2 + $0x18] sm:$0xff]  ;;  %v1035_v42 = vld [vmem:[#allocation2 + $0x80] sm:$0xff]  ;;  %v1049_v63 = vld [vmem:[#allocation2 + $0xf0] sm:$0xff] }
   0xf   :  { %269 = vmatpush.bf16.msra.mxu1 %v1032_v5  ;;  %331 = vmatpush.bf16.msra.mxu2 %v1041_v31  ;;  %v1050_v62 = vld [vmem:[#allocation2 + $0xf8] sm:$0xff]  ;;  %v1048_v0 = vld [vmem:[#allocation2 + $0xe8] sm:$0xff]  ;;  %v1047_v1 = vld [vmem:[#allocation2 + $0xe0] sm:$0xff] }
  0x10   :  { %v1046_v3 = vld [vmem:[#allocation2 + $0xd8] sm:$0xff]  ;;  %v1057_v30 = vld [vmem:[#allocation2 + $0x130] sm:$0xff]  ;;  %v1056_v31 = vld [vmem:[#allocation2 + $0x128] sm:$0xff] }
  0x12   :  { %207 = vmatpush.bf16.msra.mxu0 %v1023_v6 }
  0x13   :  { %270 = vmatpush.bf16.msra.mxu1 %v1031_v7  ;;  %332 = vmatpush.bf16.msra.mxu2 %v1040_v32  ;;  %v1055_v32 = vld [vmem:[#allocation2 + $0x120] sm:$0xff] }
  0x16   :  { %208 = vmatpush.bf16.msra.mxu0 %v1022_v8 }
  0x17   :  { %271 = vmatpush.bf16.msra.mxu1 %v1030_v9  ;;  %333 = vmatpush.bf16.msra.mxu2 %v1039_v33  ;;  %v1054_v33 = vld [vmem:[#allocation2 + $0x118] sm:$0xff] }
  0x1a   :  { %209 = vmatpush.bf16.msra.mxu0 %v1021_v10  ;;  %v1045_v10 = vld [vmem:[#allocation2 + $0xd0] sm:$0xff] }
  0x1b   :  { %272 = vmatpush.bf16.msra.mxu1 %v1029_v11  ;;  %334 = vmatpush.bf16.msra.mxu2 %v1038_v34  ;;  %v1044_v11 = vld [vmem:[#allocation2 + $0xc8] sm:$0xff]  ;;  %v1053_v34 = vld [vmem:[#allocation2 + $0x110] sm:$0xff] }
  0x1e   :  { %210 = vmatpush.bf16.msra.mxu0 %v1020_v12  ;;  %v1043_v12 = vld [vmem:[#allocation2 + $0xc0] sm:$0xff] }
  0x1f   :  { %273 = vmatpush.bf16.msra.mxu1 %v1028_v13  ;;  %335 = vmatpush.bf16.msra.mxu2 %v1037_v36 }
  0x22   :  { %211 = vmatpush.bf16.msra.mxu0 %v1019_v14 }
  0x23   :  { %274 = vmatpush.bf16.msra.mxu1 %v1027_v15  ;;  %336 = vmatpush.bf16.msra.mxu2 %v1036_v39 }
  0x25   :  { %212 = vmatmul.bf16.vlgmr.msra.gmra.mxu0 %v1018_v16 }
  0x26   :  { %275 = vmatmul.bf16.vlgmr.msra.gmra.mxu1 %v1018_v16 }
  0x27   :  { %337 = vmatpush.bf16.msra.mxu2 %v1035_v42 }
  0x2a   :  { %338 = vmatmul.bf16.vlgmr.msra.gmra.mxu2 %v1018_v16  ;;  %v31_v16 = vld [vmem:[%s1194_s0] sm:$0xff]  }
  0xa2   :  { %v213_v18 = vpop.f32.mrf.mxu0 }
  0xa3   :  { %v276_v17 = vpop.f32.mrf.mxu1  ;;  %v214_v27 = vadd.f32 %v213_v18, %v149_v24  ;;  %v466_v18 = vunpack.c.l.bf16 %v31_v16 }
  0xa4   :  { %v277_v22 = vadd.f32 %v276_v17, %v218_v20  ;;  %v403_v17 = vperm.slane %v1156_v19, 3 }
  0xaa   :  { %v215_v25 = vpop.f32.mrf.mxu0 }
  0xab   :  { %v278_v21 = vpop.f32.mrf.mxu1  ;;  %v216_v28 = vadd.f32 %v215_v25, %v149_v24  ;;  %v467_v24 = vunpack.c.h.bf16 %v31_v16  ;;  %v1062_v16 = vld [vmem:[#allocation2 + $0x158] sm:$0xff] }
  0xac   :  { %v279_v23 = vadd.f32 %v278_v21, %v218_v20 }
  0xad   :  { %v344_v29 = vpack.c.bf16 %v216_v28, %v214_v27  ;;  %v339_v56 = vpop.f32.mrf.mxu2 }
  0xae   :  { %v345_v26 = vpack.c.bf16 %v279_v23, %v277_v22  ;;  %v340_v58 = vadd.f32 %v339_v56, %v281_v57 }
  0xb0   :  { %353 = vmatpush.bf16.xpose.msra.mxu3 %v345_v26 }
  0xb5   :  { %v341_v59 = vpop.f32.mrf.mxu2 }
  0xb6   :  { %v342_v60 = vadd.f32 %v341_v59, %v281_v57 }
  0xb7   :  { %354 = vmatmul.bf16.vlgmr.msra.gmra.mxu3 %v344_v29  ;;  %v1058_v29 = vld [vmem:[#allocation2 + $0x138] sm:$0xff] }
  0xb8   :  { %v384_v61 = vpack.c.bf16 %v342_v60, %v340_v58  ;;  %570 = vmatpush.bf16.msrb.mxu0 %v1058_v29 }
  0xba   :  { %395 = vmatpush.bf16.msrb.mxu3 %v384_v61 }
  0xbc   :  { %571 = vmatpush.bf16.msrb.mxu0 %v1057_v30 }
  0xbe   :  { %452 = vmatpush.bf16.msra.mxu3 %v1050_v62 }
  0xc0   :  { %572 = vmatpush.bf16.msrb.mxu0 %v1056_v31 }
  0xc2   :  { %453 = vmatpush.bf16.msra.mxu3 %v1049_v63 }
  0xc4   :  { %573 = vmatpush.bf16.msrb.mxu0 %v1055_v32 }
  0xc6   :  { %454 = vmatpush.bf16.msra.mxu3 %v1048_v0 }
  0xc8   :  { %574 = vmatpush.bf16.msrb.mxu0 %v1054_v33 }
  0xca   :  { %455 = vmatpush.bf16.msra.mxu3 %v1047_v1  ;;  %v514_v1 = vperm.slane %v1156_v19, 4 }
  0xcc   :  { %575 = vmatpush.bf16.msrb.mxu0 %v1053_v34 }
  0xce   :  { %456 = vmatpush.bf16.msra.mxu3 %v1046_v3 }
  0xd2   :  { %457 = vmatpush.bf16.msra.mxu3 %v1045_v10 }
  0xd6   :  { %458 = vmatpush.bf16.msra.mxu3 %v1044_v11 }
  0xda   :  { %459 = vmatpush.bf16.msra.mxu3 %v1043_v12  ;;  %v1066_v12 = vld [vmem:[#allocation2 + $0x178] sm:$0xff] }
  0xdb   :  { %652 = vmatpush.bf16.msrb.mxu1 %v1066_v12 }
 0x13a   :  { %v355_v37 = vpop.f32.mrf.mxu3 }
 0x13b   :  { %v356_v38 = vadd.f32 %v355_v37, %v35_v35 }
 0x13d   :  { %v361_v40 = vsel %vm360_vm0, %v356_v38, -inf }
 0x13e   :  { %362 = vmax.xlane.f32.xlu0 %v361_v40 }
 0x142   :  { %v357_v43 = vpop.f32.mrf.mxu3 }
 0x143   :  { %v358_v44 = vadd.f32 %v357_v43, %v36_v41  ;;  %v1051_v41 = vld [vmem:[#allocation2 + $0x100] sm:$0xff] }
 0x145   :  { %v364_v45 = vsel %vm360_vm0, %v358_v44, -inf }
 0x146   :  { %365 = vmax.xlane.f32.xlu0 %v364_v45 }
 0x1b1   :  { %v363_v46 = vpop.xlane.xlu0 %362 }
 0x1b2   :  { %v367_v47 = vsub.f32 %v356_v38, %v363_v46  ;;  %v1052_v38 = vld [vmem:[#allocation2 + $0x108] sm:$0xff] }
 0x1b3   :  { %576 = vmatpush.bf16.msrb.mxu0 %v1052_v38 }
 0x1b4   :  { %v369_v48 = vmul.f32 1.442695, %v367_v47 }
 0x1b6   :  { %1078 = vpow2.f32 %v369_v48 }
 0x1b7   :  { %577 = vmatpush.bf16.msrb.mxu0 %v1051_v41 }
 0x1b9   :  { %v366_v49 = vpop.xlane.xlu0 %365 }
 0x1ba   :  { %v368_v50 = vsub.f32 %v358_v44, %v366_v49 }
 0x1bc   :  { %v1079_v51 = vpop.eup %1078  ;;  %v371_v52 = vmul.f32 1.442695, %v368_v50 }
 0x1bd   :  { %v373_v53 = vsel %vm360_vm0, %v1079_v51, 0.0 }
 0x1be   :  { %1080 = vpow2.f32 %v371_v52  ;;  %374 = vadd.xlane.f32.xlu1 %v373_v53 }
 0x1c4   :  { %v1081_v54 = vpop.eup %1080 }
 0x1c5   :  { %v376_v55 = vsel %vm360_vm0, %v1081_v54, 0.0 }
 0x1c6   :  { %377 = vadd.xlane.f32.xlu1 %v376_v55 }
 0x231   :  { %v375_v2 = vpop.xlane.xlu1 %374 }
 0x232   :  { %1082 = vrcp.f32 %v375_v2 }
 0x238   :  { %v1083_v5 = vpop.eup %1082 }
 0x239   :  { %v378_v4 = vpop.xlane.xlu1 %377  ;;  %v381_v7 = vmul.f32 %v1083_v5, %v1079_v51 }
 0x23a   :  { %1084 = vrcp.f32 %v378_v4 }
 0x240   :  { %v1085_v6 = vpop.eup %1084 }
 0x241   :  { %v382_v8 = vmul.f32 %v1085_v6, %v1081_v54 }
 0x243   :  { %v383_v9 = vpack.c.bf16 %v382_v8, %v381_v7  ;;  %v517_v7 = vperm.slane %v1156_v19, 5 }
 0x245   :  { %889 = vmatmul.msk.bf16.vlgmr.msrb.gmra.mxu3 %vm360_vm0, %v383_v9 }
 0x2c8   :  { %v397_v13 = vpop.f32.mrf.mxu3 }
 0x2d0   :  { %v399_v14 = vpop.f32.mrf.mxu3 }
 0x2d1   :  { %v402_v15 = vpack.c.bf16 %v399_v14, %v397_v13  ;;  %v1065_v13 = vld [vmem:[#allocation2 + $0x170] sm:$0xff]  ;;  %v1064_v14 = vld [vmem:[#allocation2 + $0x168] sm:$0xff] }
 0x2d2   :  { %653 = vmatpush.bf16.msrb.mxu1 %v1065_v13 }
 0x2d3   :  { %460 = vmatmul.bf16.vlgmr.msra.gmra.mxu3 %v402_v15  ;;  %v1063_v15 = vld [vmem:[#allocation2 + $0x160] sm:$0xff] }
 0x2d6   :  { %654 = vmatpush.bf16.msrb.mxu1 %v1064_v14 }
 0x2da   :  { %655 = vmatpush.bf16.msrb.mxu1 %v1063_v15 }
 0x2de   :  { %656 = vmatpush.bf16.msrb.mxu1 %v1062_v16 }
 0x356   :  { %v461_v20 = vpop.f32.mrf.mxu3 }
 0x357   :  { %v462_v21 = vadd.f32 %v461_v20, %v403_v17  ;;  %v1181_v20 = vld [vmem:[%s1196_s2 + $0x8] sm:$0xff] }
 0x359   :  { %v468_v22 = vadd.f32 %v466_v18, %v462_v21  ;;  %v1060_v18 = vld [vmem:[#allocation2 + $0x148] sm:$0xff]  ;;  %v521_v21 = vperm.slane %v1181_v20, 0 }
 0x35b   :  { %470 = vadd.xlane.f32.xlu2 %v468_v22  ;;  %v476_v23 = vmul.f32 %v468_v22, %v468_v22 }
 0x35d   :  { %478 = vadd.xlane.f32.xlu0 %v476_v23 }
 0x35e   :  { %v463_v25 = vpop.f32.mrf.mxu3 }
 0x35f   :  { %v464_v26 = vadd.f32 %v463_v25, %v403_v17  ;;  %v1061_v17 = vld [vmem:[#allocation2 + $0x150] sm:$0xff] }
 0x360   :  { %657 = vmatpush.bf16.msrb.mxu1 %v1061_v17 }
 0x361   :  { %v469_v27 = vadd.f32 %v467_v24, %v464_v26 }
 0x363   :  { %472 = vadd.xlane.f32.xlu2 %v469_v27  ;;  %v477_v28 = vmul.f32 %v469_v27, %v469_v27 }
 0x364   :  { %658 = vmatpush.bf16.msrb.mxu1 %v1060_v18 }
 0x365   :  { %480 = vadd.xlane.f32.xlu1 %v477_v28 }
 0x3ce   :  { %v471_v35 = vpop.xlane.xlu2 %470 }
 0x3cf   :  { %v474_v36 = vmul.f32 0.03125, %v471_v35 }
 0x3d0   :  { %v479_v37 = vpop.xlane.xlu0 %478 }
 0x3d1   :  { %v484_v39 = vmul.f32 %v474_v36, %v474_v36  ;;  %v482_v40 = vmul.f32 0.03125, %v479_v37  ;;  %v488_v62 = vsub.f32 %v468_v22, %v474_v36  ;;  %v1059_v22 = vld [vmem:[#allocation2 + $0x140] sm:$0xff] }
 0x3d2   :  { %659 = vmatpush.bf16.msrb.mxu1 %v1059_v22 }
 0x3d3   :  { %v486_v42 = vsub.f32 %v482_v40, %v484_v39 }
 0x3d5   :  { %v490_v43 = vadd.f32 1e-05, %v486_v42 }
 0x3d6   :  { %v473_v44 = vpop.xlane.xlu2 %472 }
 0x3d7   :  { %1086 = vrsqrt.f32 %v490_v43  ;;  %v475_v45 = vmul.f32 0.03125, %v473_v44  ;;  %vm498_vm2 = vweird.f32 %v490_v43 }
 0x3d8   :  { %v481_v46 = vpop.xlane.xlu1 %480 }
 0x3d9   :  { %v485_v47 = vmul.f32 %v475_v45, %v475_v45  ;;  %v483_v48 = vmul.f32 0.03125, %v481_v46  ;;  %v489_v3 = vsub.f32 %v469_v27, %v475_v45  ;;  %v603_v46 = vperm.slane %v1181_v20, 1 }
 0x3db   :  { %v487_v49 = vsub.f32 %v483_v48, %v485_v47 }
 0x3dd   :  { %v1087_v50 = vpop.eup %1086  ;;  %v491_v51 = vadd.f32 1e-05, %v487_v49 }
 0x3de   :  { %v493_v52 = vmul.f32 %v1087_v50, %v490_v43  ;;  %vm499_vm1 = vweird.f32 %v1087_v50 }
 0x3df   :  { %1088 = vrsqrt.f32 %v491_v51  ;;  %vm500_vm3 = vmor %vm498_vm2, %vm499_vm1  ;;  %vm508_vm5 = vweird.f32 %v491_v51 }
 0x3e0   :  { %v494_v53 = vmul.f32 %v1087_v50, %v493_v52 }
 0x3e2   :  { %v495_v54 = vmul.f32 0.5, %v494_v53 }
 0x3e4   :  { %v496_v55 = vsub.f32 1.5, %v495_v54 }
 0x3e5   :  { %v1089_v56 = vpop.eup %1088 }
 0x3e6   :  { %v497_v57 = vmul.f32 %v1087_v50, %v496_v55  ;;  %v503_v58 = vmul.f32 %v1089_v56, %v491_v51  ;;  %vm509_vm4 = vweird.f32 %v1089_v56  ;;  %v1074_v55 = vld [vmem:[#allocation2 + $0x1b8] sm:$0xff] }
 0x3e7   :  { %vm510_vm6 = vmor %vm508_vm5, %vm509_vm4  ;;  %768 = vmatpush.bf16.msrb.mxu2 %v1074_v55 }
 0x3e8   :  { %v504_v59 = vmul.f32 %v1089_v56, %v503_v58  ;;  %v501_v60 = vsel %vm500_vm3, %v1087_v50, %v497_v57  ;;  %v1072_v57 = vld [vmem:[#allocation2 + $0x1a8] sm:$0xff]  ;;  %v1071_v58 = vld [vmem:[#allocation2 + $0x1a0] sm:$0xff] }
 0x3e9   :  { %v512_v0 = vmul.f32 %v501_v60, %v488_v62  ;;  %v1069_v60 = vld [vmem:[#allocation2 + $0x190] sm:$0xff] }
 0x3ea   :  { %v505_v61 = vmul.f32 0.5, %v504_v59  ;;  %v1070_v59 = vld [vmem:[#allocation2 + $0x198] sm:$0xff] }
 0x3eb   :  { %v515_v6 = vmul.f32 %v514_v1, %v512_v0  ;;  %v1068_v0 = vld [vmem:[#allocation2 + $0x188] sm:$0xff] }
 0x3ec   :  { %v506_v63 = vsub.f32 1.5, %v505_v61 }
 0x3ed   :  { %v518_v9 = vadd.f32 %v517_v7, %v515_v6 }
 0x3ee   :  { %v507_v2 = vmul.f32 %v1089_v56, %v506_v63 }
 0x3f0   :  { %v511_v4 = vsel %vm510_vm6, %v1089_v56, %v507_v2  ;;  %v1073_v56 = vld [vmem:[#allocation2 + $0x1b0] sm:$0xff] }
 0x3f1   :  { %v513_v5 = vmul.f32 %v511_v4, %v489_v3  ;;  %769 = vmatpush.bf16.msrb.mxu2 %v1073_v56  ;;  %v1067_v3 = vld [vmem:[#allocation2 + $0x180] sm:$0xff] }
 0x3f3   :  { %v516_v8 = vmul.f32 %v514_v1, %v513_v5 }
 0x3f5   :  { %v519_v10 = vadd.f32 %v517_v7, %v516_v8  ;;  %770 = vmatpush.bf16.msrb.mxu2 %v1072_v57 }
 0x3f7   :  { %v520_v11 = vpack.c.bf16 %v519_v10, %v518_v9 }
 0x3f9   :  { %578 = vmatmul.bf16.vlgmr.msrb.gmra.mxu0 %v520_v11  ;;  %771 = vmatpush.bf16.msrb.mxu2 %v1071_v58 }
 0x3fd   :  { %772 = vmatpush.bf16.msrb.mxu2 %v1070_v59 }
 0x401   :  { %773 = vmatpush.bf16.msrb.mxu2 %v1069_v60 }
 0x405   :  { %774 = vmatpush.bf16.msrb.mxu2 %v1068_v0 }
 0x409   :  { %775 = vmatpush.bf16.msrb.mxu2 %v1067_v3 }
 0x476   :  { %v579_v23 = vpop.f32.mrf.mxu0 }
 0x477   :  { %v580_v24 = vadd.f32 %v579_v23, %v521_v21 }
 0x479   :  { %v584_v25 = vmul.f32 %v580_v24, %v580_v24 }
 0x47b   :  { %v586_v26 = vmul.f32 %v584_v25, %v580_v24 }
 0x47d   :  { %v588_v27 = vmul.f32 0.044715, %v586_v26 }
 0x47e   :  { %v581_v28 = vpop.f32.mrf.mxu0 }
 0x47f   :  { %v590_v29 = vadd.f32 %v588_v27, %v580_v24  ;;  %v582_v30 = vadd.f32 %v581_v28, %v521_v21 }
 0x481   :  { %v592_v31 = vmul.f32 0.7978846, %v590_v29  ;;  %v585_v32 = vmul.f32 %v582_v30, %v582_v30  ;;  %v712_v29 = vperm.slane %v1156_v19, 6 }
 0x483   :  { %v587_v33 = vmul.f32 %v585_v32, %v582_v30  ;;  %1090 = vtanh.f32 %v592_v31 }
 0x485   :  { %v589_v34 = vmul.f32 0.044715, %v587_v33 }
 0x487   :  { %v591_v35 = vadd.f32 %v589_v34, %v582_v30 }
 0x489   :  { %v593_v36 = vmul.f32 0.7978846, %v591_v35  ;;  %v1091_v37 = vpop.eup %1090  ;;  %v715_v35 = vperm.slane %v1156_v19, 7 }
 0x48a   :  { %v596_v38 = vadd.f32 1.0, %v1091_v37 }
 0x48b   :  { %1092 = vtanh.f32 %v593_v36 }
 0x48c   :  { %v598_v41 = vmul.f32 0.5, %v596_v38 }
 0x48e   :  { %v600_v43 = vmul.f32 %v598_v41, %v580_v24 }
 0x491   :  { %v1093_v39 = vpop.eup %1092 }
 0x492   :  { %v597_v40 = vadd.f32 1.0, %v1093_v39 }
 0x494   :  { %v599_v42 = vmul.f32 0.5, %v597_v40  ;;  %v719_v40 = vperm.slane %v1181_v20, 2 }
 0x496   :  { %v601_v44 = vmul.f32 %v599_v42, %v582_v30 }
 0x498   :  { %v602_v45 = vpack.c.bf16 %v601_v44, %v600_v43 }
 0x49a   :  { %660 = vmatmul.bf16.vlgmr.msrb.gmra.mxu1 %v602_v45 }
 0x517   :  { %v661_v47 = vpop.f32.mrf.mxu1 }
 0x518   :  { %v662_v48 = vadd.f32 %v661_v47, %v603_v46 }
 0x51a   :  { %v666_v49 = vadd.f32 %v662_v48, %v518_v9 }
 0x51c   :  { %668 = vadd.xlane.f32.xlu2 %v666_v49  ;;  %v674_v50 = vmul.f32 %v666_v49, %v666_v49 }
 0x51e   :  { %676 = vadd.xlane.f32.xlu1 %v674_v50 }
 0x51f   :  { %v663_v51 = vpop.f32.mrf.mxu1 }
 0x520   :  { %v664_v52 = vadd.f32 %v663_v51, %v603_v46 }
 0x522   :  { %v667_v53 = vadd.f32 %v664_v52, %v519_v10 }
 0x524   :  { %670 = vadd.xlane.f32.xlu0 %v667_v53  ;;  %v675_v54 = vmul.f32 %v667_v53, %v667_v53 }
 0x526   :  { %678 = vadd.xlane.f32.xlu2 %v675_v54 }
 0x58f   :  { %v669_v61 = vpop.xlane.xlu2 %668 }
 0x590   :  { %v672_v62 = vmul.f32 0.03125, %v669_v61 }
 0x591   :  { %v677_v63 = vpop.xlane.xlu1 %676 }
 0x592   :  { %v682_v1 = vmul.f32 %v672_v62, %v672_v62  ;;  %v680_v2 = vmul.f32 0.03125, %v677_v63  ;;  %v686_v26 = vsub.f32 %v666_v49, %v672_v62 }
 0x594   :  { %v684_v4 = vsub.f32 %v680_v2, %v682_v1 }
 0x596   :  { %v688_v5 = vadd.f32 1e-05, %v684_v4 }
 0x597   :  { %v671_v6 = vpop.xlane.xlu0 %670 }
 0x598   :  { %1094 = vrsqrt.f32 %v688_v5  ;;  %v673_v7 = vmul.f32 0.03125, %v671_v6  ;;  %vm696_vm8 = vweird.f32 %v688_v5 }
 0x599   :  { %v679_v8 = vpop.xlane.xlu2 %678 }
 0x59a   :  { %v683_v9 = vmul.f32 %v673_v7, %v673_v7  ;;  %v681_v10 = vmul.f32 0.03125, %v679_v8  ;;  %v687_v31 = vsub.f32 %v667_v53, %v673_v7 }
 0x59c   :  { %v685_v11 = vsub.f32 %v681_v10, %v683_v9 }
 0x59e   :  { %v1095_v12 = vpop.eup %1094  ;;  %v689_v13 = vadd.f32 1e-05, %v685_v11 }
 0x59f   :  { %v691_v14 = vmul.f32 %v1095_v12, %v688_v5  ;;  %vm697_vm7 = vweird.f32 %v1095_v12 }
 0x5a0   :  { %1096 = vrsqrt.f32 %v689_v13  ;;  %vm698_vm9 = vmor %vm696_vm8, %vm697_vm7  ;;  %vm706_vm11 = vweird.f32 %v689_v13 }
 0x5a1   :  { %v692_v15 = vmul.f32 %v1095_v12, %v691_v14 }
 0x5a3   :  { %v693_v16 = vmul.f32 0.5, %v692_v15 }
 0x5a5   :  { %v694_v17 = vsub.f32 1.5, %v693_v16 }
 0x5a6   :  { %v1097_v18 = vpop.eup %1096 }
 0x5a7   :  { %v695_v21 = vmul.f32 %v1095_v12, %v694_v17  ;;  %v701_v22 = vmul.f32 %v1097_v18, %v689_v13  ;;  %vm707_vm10 = vweird.f32 %v1097_v18 }
 0x5a8   :  { %vm708_vm12 = vmor %vm706_vm11, %vm707_vm10 }
 0x5a9   :  { %v702_v23 = vmul.f32 %v1097_v18, %v701_v22  ;;  %v699_v24 = vsel %vm698_vm9, %v1095_v12, %v695_v21 }
 0x5aa   :  { %v710_v28 = vmul.f32 %v699_v24, %v686_v26 }
 0x5ab   :  { %v703_v25 = vmul.f32 0.5, %v702_v23 }
 0x5ac   :  { %v713_v34 = vmul.f32 %v712_v29, %v710_v28 }
 0x5ad   :  { %v704_v27 = vsub.f32 1.5, %v703_v25 }
 0x5ae   :  { %v716_v37 = vadd.f32 %v715_v35, %v713_v34 }
 0x5af   :  { %v705_v30 = vmul.f32 %v1097_v18, %v704_v27 }
 0x5b1   :  { %v709_v32 = vsel %vm708_vm12, %v1097_v18, %v705_v30 }
 0x5b2   :  { %v711_v33 = vmul.f32 %v709_v32, %v687_v31 }
 0x5b4   :  { %v714_v36 = vmul.f32 %v712_v29, %v711_v33 }
 0x5b6   :  { %v717_v38 = vadd.f32 %v715_v35, %v714_v36 }
 0x5b8   :  { %v718_v39 = vpack.c.bf16 %v717_v38, %v716_v37 }
 0x5ba   :  { %776 = vmatmul.bf16.vlgmr.msrb.gmra.mxu2 %v718_v39 }
 0x63d   :  { %v777_v41 = vpop.f32.mrf.mxu2 }
 0x63e   :  { %v778_v42 = vadd.f32 %v777_v41, %v719_v40 }
 0x640   :  { %782 = vst [vmem:[%s1197_s3] sm:$0xff] %v778_v42 }
 0x645   :  { %v779_v43 = vpop.f32.mrf.mxu2 }
 0x646   :  { %v780_v44 = vadd.f32 %v779_v43, %v719_v40 }
 0x648   :  { %783 = vst [vmem:[%s1197_s3 + $0x8] sm:$0xff] %v780_v44 }
 0x649   :  { %788 = vsyncpa [#allocation3], 1 }

</bundles_post_ra>
